<compile_context>
chip_gen: v6e
topology: v6e:2x2x1
jax: 0.10.0
libtpu: 0.0.40
codegen_flags: <defaults>
</compile_context>

<pallas_src>
import math

import jax
import jax.numpy as jnp
from jax.experimental import pallas as pl
from jax.experimental.pallas import tpu as pltpu


# ----------------------------- positional table (module constant buffer) -----------

def make_positional_embedding(max_len: int, d_model: int, dtype=jnp.float32):
    """Builds the (max_len, d_model) sin/cos table exactly as the PyTorch module."""
    assert d_model % 2 == 0, "d_model must be even (as in the PyTorch module)"
    position = jnp.arange(0, max_len, dtype=jnp.float32)[:, None]              # (L, 1)
    div_term = jnp.exp(
        jnp.arange(0, d_model, 2, dtype=jnp.float32) * -(math.log(10000.0) / d_model)
    )                                                                           # (D/2,)
    angles = position * div_term                                                # (L, D/2)
    # Even columns sin, odd columns cos (interleaved).
    pe = jnp.stack([jnp.sin(angles), jnp.cos(angles)], axis=-1).reshape(max_len, d_model)
    return pe.astype(dtype)


# ----------------------------- kernels ----------------------------------------------

def _pos_enc_kernel_3d(x_ref, pe_ref, o_ref):
    # x_ref / o_ref: (ts, D) (size-1 batch dim squeezed); pe_ref: (ts, D).
    # Dropout is identity in eval mode; dtypes already match (cast done in wrapper).
    o_ref[...] = x_ref[...] + pe_ref[...]


def _pos_enc_kernel_flat(x_ref, pe_ref, o_ref):
    # x_ref / o_ref: (B, ts*D); pe_ref: (1, ts*D) broadcast over the batch rows.
    o_ref[...] = x_ref[...] + pe_ref[...]


# ----------------------------- wrapper ----------------------------------------------

def _round_up(x: int, m: int) -> int:
    return ((x + m - 1) // m) * m


def positional_encoding(x, pe, *, seq_tile=512, vmem_slab_bytes=4 * 1024 * 1024):
    """x: (B, S, D); pe: (max_len, D). Returns x + pe[:S]  (dropout = identity)."""
    B, S, D = x.shape
    max_len = pe.shape[0]
    assert pe.shape[1] == D and max_len >= S

    # Cast the table once so the pe HBM stream has the same byte width as x and
    # the kernel body is a bare add (no per-element VPU cast).
    if pe.dtype != x.dtype:
        pe = pe.astype(x.dtype)

    itemsize = jnp.dtype(x.dtype).itemsize

    if D % 128 == 0:
        # Already lane-dense: keep the (B, S, D) layout.
        # Grid = (seq tiles, batch); batch is the inner axis so the pe slab keeps
        # the same block index across consecutive steps -> its DMA is elided.
        sub = {4: 8, 2: 16, 1: 32}.get(itemsize, 8)        # sublane packing multiple
        max_rows = max(sub, ((vmem_slab_bytes // (D * itemsize)) // sub) * sub)
        ts = min(_round_up(S, sub), max(sub, (seq_tile // sub) * sub), max_rows)
        ts = max(ts, sub)
        n_s = pl.cdiv(S, ts)

        out = pl.pallas_call(
            _pos_enc_kernel_3d,
            out_shape=jax.ShapeDtypeStruct((B, S, D), x.dtype),
            grid_spec=pltpu.PrefetchScalarGridSpec(
                num_scalar_prefetch=0,
                grid=(n_s, B),
                in_specs=[
                    pl.BlockSpec((None, ts, D), lambda s, b: (b, s, 0)),  # x slab
                    pl.BlockSpec((ts, D), lambda s, b: (s, 0)),           # pe slab, reused over b
                ],
                out_specs=pl.BlockSpec((None, ts, D), lambda s, b: (b, s, 0)),
            ),
            compiler_params=pltpu.CompilerParams(
                dimension_semantics=("parallel", "parallel"),
            ),
        )(x, pe)
        return out

    # D is not a multiple of 128 (e.g. d_model = 32): flatten the trailing (S, D)
    # dims so every output block's last dim is a multiple of 128 (unmasked vst),
    # and fold the whole batch into the block so pe is fetched once per seq tile.
    g = 128 // math.gcd(D, 128)            # smallest row multiple with (ts * D) % 128 == 0
    max_rows = max(g, ((vmem_slab_bytes // max(1, B * D * itemsize)) // g) * g)
    ts = min(_round_up(S, g), max(g, (seq_tile // g) * g), max_rows)
    ts = max(ts, g)
    n_s = pl.cdiv(S, ts)

    x2 = x.reshape(B, S * D)               # collapses contiguous trailing dims: no copy
    pe2 = pe.reshape(1, max_len * D)       # no copy; full table passed, blocks pick rows

    out = pl.pallas_call(
        _pos_enc_kernel_flat,
        out_shape=jax.ShapeDtypeStruct((B, S * D), x.dtype),
        grid_spec=pltpu.PrefetchScalarGridSpec(
            num_scalar_prefetch=0,
            grid=(n_s,),
            in_specs=[
                pl.BlockSpec((B, ts * D), lambda s: (0, s)),   # all batch rows, one seq tile
                pl.BlockSpec((1, ts * D), lambda s: (0, s)),   # pe seq tile, shared over batch
            ],
            out_specs=pl.BlockSpec((B, ts * D), lambda s: (0, s)),
        ),
        compiler_params=pltpu.CompilerParams(
            dimension_semantics=("parallel",),
        ),
    )(x2, pe2)
    return out.reshape(B, S, D)


# ----------------------------- reference & test -------------------------------------

def _reference(x, pe):
    S = x.shape[1]
    return (x + pe[:S][None, :, :].astype(x.dtype)).astype(x.dtype)


if __name__ == "__main__":
    key = jax.random.PRNGKey(0)

    # Main case, consistent with the module at small scale: batch=2, seq=8, d_model=32.
    B, S, D = 2, 8, 32
    MAX_LEN = 64  # stands in for max_len=5000 at test scale
    x = jax.random.normal(key, (B, S, D), dtype=jnp.float32)
    pe = make_positional_embedding(MAX_LEN, D, dtype=x.dtype)

    out = jax.block_until_ready(positional_encoding(x, pe))
    assert out.shape == (B, S, D)
    assert jnp.allclose(out, _reference(x, pe), atol=1e-6, rtol=1e-6), "mismatch (flat path)"

    # Extra coverage: multi-tile flat path with a ragged tail (S % ts != 0).
    B2, S2, D2 = 2, 20, 32
    x2 = jax.random.normal(jax.random.PRNGKey(1), (B2, S2, D2), dtype=jnp.float32)
    pe2 = make_positional_embedding(MAX_LEN, D2, dtype=x2.dtype)
    out2 = jax.block_until_ready(positional_encoding(x2, pe2, seq_tile=8))
    assert jnp.allclose(out2, _reference(x2, pe2), atol=1e-6, rtol=1e-6), "mismatch (flat ragged)"

    # Extra coverage: lane-dense 3D path (D multiple of 128) with batch-inner pe reuse.
    B3, S3, D3 = 2, 20, 128
    x3 = jax.random.normal(jax.random.PRNGKey(2), (B3, S3, D3), dtype=jnp.float32)
    pe3 = make_positional_embedding(MAX_LEN, D3, dtype=x3.dtype)
    out3 = jax.block_until_ready(positional_encoding(x3, pe3, seq_tile=8))
    assert jnp.allclose(out3, _reference(x3, pe3), atol=1e-6, rtol=1e-6), "mismatch (3D path)"

    print("KERNEL_OK")
</pallas_src>

<mosaic_0001>
module attributes {stable_mosaic.version = 11 : i64} {
  func.func @_pos_enc_kernel_flat(%arg0: i32, %arg1: memref<2x256xf32, #tpu.memory_space<vmem>>, %arg2: memref<1x256xf32, #tpu.memory_space<vmem>>, %arg3: memref<2x256xf32, #tpu.memory_space<vmem>>) attributes {dimension_semantics = [#tpu.dimension_semantics<parallel>], iteration_bounds = array<i64: 1>, scalar_prefetch = 0 : i64, scratch_operands = 0 : i64, tpu.core_type = #tpu.core_type<tc>, window_params = [{transform_indices = @transform_0, window_bounds = array<i64: 2, 256>}, {transform_indices = @transform_1, window_bounds = array<i64: 1, 256>}, {transform_indices = @transform_2, window_bounds = array<i64: 2, 256>}]} {
    %c0 = arith.constant 0 : index
    %c0_0 = arith.constant 0 : index
    %0 = vector.load %arg1[%c0, %c0_0] : memref<2x256xf32, #tpu.memory_space<vmem>>, vector<2x256xf32>
    %c0_1 = arith.constant 0 : index
    %c0_2 = arith.constant 0 : index
    %1 = vector.load %arg2[%c0_1, %c0_2] : memref<1x256xf32, #tpu.memory_space<vmem>>, vector<1x256xf32>
    %2 = vector.broadcast %1 : vector<1x256xf32> to vector<2x256xf32>
    %3 = arith.addf %0, %2 : vector<2x256xf32>
    %c0_3 = arith.constant 0 : index
    %c0_4 = arith.constant 0 : index
    %4 = vector.load %arg3[%c0_3, %c0_4] : memref<2x256xf32, #tpu.memory_space<vmem>>, vector<2x256xf32>
    tpu.vector_store %arg3[%c0_3, %c0_4], %3 {strides = array<i32>} : memref<2x256xf32, #tpu.memory_space<vmem>>, vector<2x256xf32>,
    return
  }
  func.func @transform_0(%arg0: i32) -> (i32, i32) {
    %c0_i32 = arith.constant 0 : i32
    %c0_i32_0 = arith.constant 0 : i32
    return %c0_i32, %arg0 : i32, i32
  }
  func.func @transform_1(%arg0: i32) -> (i32, i32) {
    %c0_i32 = arith.constant 0 : i32
    %c0_i32_0 = arith.constant 0 : i32
    return %c0_i32, %arg0 : i32, i32
  }
  func.func @transform_2(%arg0: i32) -> (i32, i32) {
    %c0_i32 = arith.constant 0 : i32
    %c0_i32_0 = arith.constant 0 : i32
    return %c0_i32, %arg0 : i32, i32
  }
}

</mosaic_0001>

<bundles_post_ra>
// kernel: tpu_custom_call.1
= control target key start
LH: loop header
LB: loop body
LE: loop exit
PB: predicated region body
PF: predicated region fallthrough
CT: control target
= control target key end

     0   :  { %7 = vsyncpa [#allocation3], 0  ;;  %s172_s0 = inlined_call_operand.hbm [shape: f32[2,256], index: 0, kind: input, shape index: {}]   ;;  %s173_s1 = inlined_call_operand.hbm [shape: f32[1,2048], index: 1, kind: input, shape index: {}]   ;;  %s174_s2 = inlined_call_operand.hbm [shape: f32[2,256], index: 2, kind: output, shape index: {}]  }
   0x1   :  { %8 = vsyncpa [#allocation6], 0 }
   0x2   :  { %9 = vsyncpa [#allocation4], 0  ;;  %s144_s9 = smov [#allocation2]   ;;  %s145_s11 = smov [#allocation5]  }
   0x3   :  { %s16_s10 = sshll.u32 %s144_s9, 4  ;;  %s26_s12 = sshll.u32 %s145_s11, 4  ;;  %s17_s10 = int_to_ptr.vmem [resolvable:$true] %s16_s10  ;;  %s27_s12 = int_to_ptr.vmem [resolvable:$true] %s26_s12 }
   0x4   :  { %s86_s13 = scalar_lea.vmem %s17_s10, 64  ;;  %p91_p1 = scmp.lt.s32.totalorder %s17_s10, %s17_s10 }
   0x5   :  { %p87_p0 = scmp.ne.s32.totalorder %s17_s10, %s86_s13  ;;  %p92_p2 = scmp.lt.s32.totalorder %s86_s13, %s86_s13 }
   0x7   :  { %p93_p3 = por %p92_p2, %p91_p1 }
   0x9   :  { %p94_p4 = pnand %p93_p3, %p87_p0 }
   0xb   :  { %97 = shalt.err (!%p94_p4)
}
   0xc   :  { %19 = dma.hbm_to_vmem [thread:$0]  %s172_s0, 64, %s17_s10, [#allocation3]  }
   0xd   :  { %s106_s16 = scalar_lea.vmem %s27_s12, 32  ;;  %p111_p6 = scmp.lt.s32.totalorder %s27_s12, %s27_s12 }
   0xe   :  { %p107_p5 = scmp.ne.s32.totalorder %s27_s12, %s106_s16  ;;  %p112_p7 = scmp.lt.s32.totalorder %s106_s16, %s106_s16 }
  0x10   :  { %p113_p8 = por %p112_p7, %p111_p6 }
  0x12   :  { %p114_p9 = pnand %p113_p8, %p107_p5 }
  0x14   :  { %117 = shalt.err (!%p114_p9)
}
  0x15   :  { %29 = dma.hbm_to_vmem [thread:$0]  %s173_s1, 32, %s27_s12, [#allocation6]  }
  0x16   :  { %138 = dma.done.wait [#allocation3], 64  }
  0x17   :  { %139 = vsyncadd [#allocation3], 4294967232 }
  0x18   :  { %140 = dma.done.wait [#allocation6], 32  }
  0x19   :  { %141 = vsyncadd [#allocation6], 4294967264  ;;  %v39_v0 = vlaneseq  ;;  %v146_v1 = vmov 1983009808   ;;  %v37_v7 = vld [vmem:[#allocation5] sm:$0x3] }
  0x1a   :  { %v49_v2 = vunpack.c.l.s4 %v146_v1  ;;  %v36_v12 = vld [vmem:[#allocation2] sm:$0xf]  ;;  %s147_s0 = smov [#allocation7]  }
  0x1b   :  { %v40_v3 = vshrl.u32 %v39_v0, 7  ;;  %s64_s19 = sshll.u32 %s147_s0, 4  ;;  %s65_s19 = int_to_ptr.vmem [resolvable:$true] %s64_s19 }
  0x1c   :  { %v50_v6 = vunpack.c.0.s8 %v49_v2  ;;  %s118_s1 = scalar_lea.vmem %s65_s19, 64  ;;  %p123_p11 = scmp.lt.s32.totalorder %s65_s19, %s65_s19 }
  0x1d   :  { %v41_v4 = vsub.s32 0, %v40_v3  ;;  %v45_v5 = vsub.s32 1, %v40_v3  ;;  %p119_p10 = scmp.ne.s32.totalorder %s65_s19, %s118_s1  ;;  %p124_p12 = scmp.lt.s32.totalorder %s118_s1, %s118_s1 }
  0x1e   :  { %v53_v10 = vsub.s32 %v50_v6, %v40_v3 }
  0x1f   :  { %v42_v8 = vrot.slane %v37_v7, %v41_v4  ;;  %v46_v9 = vrot.slane %v37_v7, %v45_v5  ;;  %p125_p13 = por %p124_p12, %p123_p11 }
  0x21   :  { %v47_v11 = vcombine.low %v42_v8, %v46_v9  ;;  %p126_p0 = pnand %p125_p13, %p119_p10 }
  0x23   :  { %v54_v13 = vrot.slane %v47_v11, %v53_v10 }
  0x25   :  { %v56_v14 = vadd.f32 %v54_v13, %v36_v12 }
  0x27   :  { %57 = vst [vmem:[#allocation7] sm:$0xf] %v56_v14 }
  0x28   :  { %129 = shalt.err (!%p126_p0)
}
  0x29   :  { %67 = dma.vmem_to_hbm [thread:$0]  %s65_s19, 64, %s174_s2, [#allocation4]  }
  0x2a   :  { %142 = dma.done.wait [#allocation4], 64  }
  0x2b   :  { %143 = vsyncadd [#allocation4], 4294967232 }
  0x2c   :  { %71 = vsyncpa [#allocation3], 1 }
  0x2d   :  { %72 = vsyncpa [#allocation6], 1 }
  0x2e   :  { %73 = vsyncpa [#allocation4], 1 }

</bundles_post_ra>
